<compile_context>
chip_gen: v7x
topology: tpu7x:2x2x1
jax: 0.10.0
libtpu: 0.0.40
codegen_flags: <defaults>
</compile_context>

<pallas_src>
import functools

import jax
import jax.numpy as jnp
from jax.experimental import pallas as pl
from jax.experimental.pallas import tpu as pltpu


# ----------------------------- Pallas kernel -------------------------------

def _appnp2bn_kernel(a_ref, ap_ref, xt_ref, w1t_ref, t1_ref,
                     w2t_ref, t2_ref, wfct_ref, bfc_ref, o_ref, *, K, alpha):
    """Fused conv1+bn1+relu -> conv2+bn2+relu -> APPNP(K) -> fc -> log_softmax.

    Everything is in transposed [features, nodes] layout (nodes on lanes, so
    matmul outputs are lane-dense and stores are unmasked).

    a_ref   : [N, N]   bf16  GCN-normalized adjacency (symmetric), resident in VMEM
    ap_ref  : [N, N]   bf16  (1 - alpha) * A_hat, used by the APPNP loop
    xt_ref  : [Fin, N] bf16  transposed node features
    w*t_ref : bf16 pre-transposed weights with BN scale folded into the rows
    t*_ref  : [F, 1]   f32   fused conv-bias + BN shift
    o_ref   : [C, N]   f32   log-probabilities (transposed)
    """
    a = a_ref[...]          # GCN adjacency, loaded once, reused 3x
    a_appnp = ap_ref[...]   # (1-alpha)-prescaled adjacency for the K-step loop

    def propagate(h_bf16, adj):
        # (A @ H)^T == H^T @ A  (A symmetric); bf16 MXU, f32 accumulation.
        return jnp.dot(h_bf16, adj, preferred_element_type=jnp.float32)

    def gcn_bn_relu(wt_ref, t_ref, xt_bf16):
        # BN scale is folded into W^T's rows and conv bias + BN shift into t,
        # so a whole GCNConv+BN+ReLU block is two matmuls + one add + one max.
        h = jnp.dot(wt_ref[...], xt_bf16, preferred_element_type=jnp.float32)
        return jnp.maximum(propagate(h.astype(jnp.bfloat16), a) + t_ref[...], 0.0)

    h = gcn_bn_relu(w1t_ref, t1_ref, xt_ref[...])
    h = gcn_bn_relu(w2t_ref, t2_ref, h.astype(jnp.bfloat16))

    # APPNP, fully unrolled:  x_{k+1} = x_k @ ((1-alpha) * A_hat) + alpha * x_0
    ah = alpha * h
    x = h
    for _ in range(K):
        x = propagate(x.astype(jnp.bfloat16), a_appnp) + ah

    # fc + log_softmax over classes (classes = axis 0 in this layout).
    z = jnp.dot(wfct_ref[...], x.astype(jnp.bfloat16),
                preferred_element_type=jnp.float32) + bfc_ref[...]
    z = z - jnp.max(z, axis=0, keepdims=True)
    o_ref[...] = z - jnp.log(jnp.sum(jnp.exp(z), axis=0, keepdims=True))


# ------------------------------ Pallas wrapper ------------------------------

def _full2d(shape):
    return pl.BlockSpec(shape, lambda i: (0, 0))


@functools.partial(jax.jit, static_argnames=("K", "alpha"))
def appnp2bn_fused(a_hat, a_appnp, xt, w1t, t1, w2t, t2, wfct, bfc, *, K, alpha):
    n = a_hat.shape[0]
    h = w1t.shape[0]
    fin = w1t.shape[1]
    c = wfct.shape[0]

    operands = (a_hat, a_appnp, xt, w1t, t1, w2t, t2, wfct, bfc)

    # Advisory cost estimate: matmul flops of conv1/conv2/APPNP/fc.
    flops = 2 * n * (h * fin + h * n          # conv1: weight dot + propagation
                     + h * h + h * n          # conv2
                     + K * h * n              # APPNP (K propagations)
                     + c * h)                 # fc
    bytes_accessed = (sum(int(op.size) * op.dtype.itemsize for op in operands)
                      + c * n * 4)

    kern = functools.partial(_appnp2bn_kernel, K=K, alpha=alpha)
    return pl.pallas_call(
        kern,
        out_shape=jax.ShapeDtypeStruct((c, n), jnp.float32),
        grid=(1,),
        in_specs=[_full2d(op.shape) for op in operands],
        out_specs=_full2d((c, n)),
        compiler_params=pltpu.CompilerParams(
            dimension_semantics=("arbitrary",),
            vmem_limit_bytes=32 * 1024 * 1024),
        cost_estimate=pl.CostEstimate(
            flops=flops,
            transcendentals=n * (c + 1),
            bytes_accessed=bytes_accessed),
    )(*operands)


# -------------------------------- JAX glue ----------------------------------

def build_norm_adj(edge_index, num_nodes):
    """Dense GCN-normalized adjacency with self-loops: D^{-1/2}(A+I)D^{-1/2}."""
    row, col = edge_index
    adj = jnp.zeros((num_nodes, num_nodes), jnp.float32)
    adj = adj.at[row, col].set(1.0)
    adj = jnp.maximum(adj, jnp.eye(num_nodes, dtype=jnp.float32))  # self-loops
    deg = adj.sum(axis=1)
    dinv = jax.lax.rsqrt(jnp.maximum(deg, 1e-12))
    return dinv[:, None] * adj * dinv[None, :]


def prepare_appnp2bn(edge_index, num_nodes, params, *, alpha, eps=1e-5):
    """One-time prep (per graph / per checkpoint) -- hoisted off the hot path.

    Builds the normalized adjacency (O(N^2) work that would otherwise dominate
    the fused kernel) and folds eval-mode BatchNorm into the conv weights /
    shifts, plus the (1-alpha) APPNP scale into a second bf16 copy of A_hat.
    """
    a = build_norm_adj(edge_index, num_nodes)
    a_hat = a.astype(jnp.bfloat16)
    a_appnp = ((1.0 - alpha) * a).astype(jnp.bfloat16)

    def fold(w, b, gamma, beta, mean, var):
        s = gamma * jax.lax.rsqrt(var + eps)
        wt = (s[:, None] * w.T).astype(jnp.bfloat16)          # row-scaled W^T
        t = (s * (b - mean) + beta)[:, None].astype(jnp.float32)
        return wt, t

    w1t, t1 = fold(params["w1"], params["b1"], params["bn1_gamma"],
                   params["bn1_beta"], params["bn1_mean"], params["bn1_var"])
    w2t, t2 = fold(params["w2"], params["b2"], params["bn2_gamma"],
                   params["bn2_beta"], params["bn2_mean"], params["bn2_var"])
    wfct = params["wfc"].T.astype(jnp.bfloat16)
    bfc = params["bfc"][:, None].astype(jnp.float32)
    return a, (a_hat, a_appnp, w1t, t1, w2t, t2, wfct, bfc)


def appnp2bn_forward(x, prepped, *, alpha=0.1, K=10):
    """Mirrors APPNP2BN.forward in eval mode (running-stat BatchNorm)."""
    a_hat, a_appnp, w1t, t1, w2t, t2, wfct, bfc = prepped
    xt = x.T.astype(jnp.bfloat16)
    out_t = appnp2bn_fused(a_hat, a_appnp, xt, w1t, t1, w2t, t2, wfct, bfc,
                           K=K, alpha=alpha)
    return out_t.T                                       # back to [N, num_classes]


def appnp2bn_reference(x, a, params, *, alpha, K, eps=1e-5):
    """Pure-JAX f32 reference matching the PyTorch module (eval mode)."""
    def bn(h, g, b, m, v):
        return g * (h - m) * jax.lax.rsqrt(v + eps) + b

    h = a @ (x @ params["w1"]) + params["b1"]
    h = jax.nn.relu(bn(h, params["bn1_gamma"], params["bn1_beta"],
                       params["bn1_mean"], params["bn1_var"]))
    h = a @ (h @ params["w2"]) + params["b2"]
    h = jax.nn.relu(bn(h, params["bn2_gamma"], params["bn2_beta"],
                       params["bn2_mean"], params["bn2_var"]))
    x0 = h
    for _ in range(K):
        h = (1.0 - alpha) * (a @ h) + alpha * x0
    z = h @ params["wfc"] + params["bfc"]
    return jax.nn.log_softmax(z, axis=1)


# ---------------------------------- main -------------------------------------

if __name__ == "__main__":
    key = jax.random.PRNGKey(0)
    keys = jax.random.split(key, 16)

    N = 128                 # nodes -> lane dimension inside the kernel
    in_features = 16
    hidden_dim = 32
    num_classes = 32        # must equal hidden_dim: bn2 = BatchNorm1d(num_classes)
                            # is applied to conv2's hidden_dim-wide output.
    E = 256                 # directed edges before symmetrization
    alpha = 0.1
    K = 10

    x = jax.random.normal(keys[0], (N, in_features), dtype=jnp.float32)
    e = jax.random.randint(keys[1], (2, E), 0, N)
    edge_index = jnp.concatenate([e, e[::-1]], axis=1)   # symmetrize (A must be symmetric)

    def uinit(k, shape, fan_in):
        s = float(fan_in) ** -0.5
        return jax.random.uniform(k, shape, jnp.float32, -s, s)

    params = {
        "w1": uinit(keys[2], (in_features, hidden_dim), in_features),
        "b1": uinit(keys[3], (hidden_dim,), in_features),
        "bn1_gamma": jax.random.uniform(keys[4], (hidden_dim,), jnp.float32, 0.5, 1.5),
        "bn1_beta": 0.1 * jax.random.normal(keys[5], (hidden_dim,), jnp.float32),
        "bn1_mean": 0.1 * jax.random.normal(keys[6], (hidden_dim,), jnp.float32),
        "bn1_var": jax.random.uniform(keys[7], (hidden_dim,), jnp.float32, 0.5, 1.5),
        "w2": uinit(keys[8], (hidden_dim, hidden_dim), hidden_dim),
        "b2": uinit(keys[9], (hidden_dim,), hidden_dim),
        "bn2_gamma": jax.random.uniform(keys[10], (num_classes,), jnp.float32, 0.5, 1.5),
        "bn2_beta": 0.1 * jax.random.normal(keys[11], (num_classes,), jnp.float32),
        "bn2_mean": 0.1 * jax.random.normal(keys[12], (num_classes,), jnp.float32),
        "bn2_var": jax.random.uniform(keys[13], (num_classes,), jnp.float32, 0.5, 1.5),
        "wfc": uinit(keys[14], (hidden_dim, num_classes), hidden_dim),
        "bfc": uinit(keys[15], (num_classes,), hidden_dim),
    }

    # One-time prep (adjacency + BN/weight folding), then the jitted hot path.
    a_f32, prepped = prepare_appnp2bn(edge_index, N, params, alpha=alpha)

    out = appnp2bn_forward(x, prepped, alpha=alpha, K=K)
    out = jax.block_until_ready(out)
    assert out.shape == (N, num_classes)

    # log-probabilities: each row exponentiates/sums to ~1 (self-consistency).
    assert jnp.allclose(jnp.exp(out).sum(axis=1), 1.0, atol=1e-3)

    # Compare against the f32 reference (bf16 A/weights compound over 12
    # propagations, so the tolerance is deliberately loose).
    ref = appnp2bn_reference(x, a_f32, params, alpha=alpha, K=K)
    max_err = float(jnp.max(jnp.abs(out - ref)))
    assert max_err < 0.2, f"max |kernel - reference| = {max_err}"

    print("KERNEL_OK")
</pallas_src>

<mosaic_0001>
module attributes {stable_mosaic.version = 11 : i64} {
  func.func @_appnp2bn_kernel(%arg0: i32, %arg1: memref<128x128xbf16, #tpu.memory_space<vmem>>, %arg2: memref<128x128xbf16, #tpu.memory_space<vmem>>, %arg3: memref<16x128xbf16, #tpu.memory_space<vmem>>, %arg4: memref<32x16xbf16, #tpu.memory_space<vmem>>, %arg5: memref<32x1xf32, #tpu.memory_space<vmem>>, %arg6: memref<32x32xbf16, #tpu.memory_space<vmem>>, %arg7: memref<32x1xf32, #tpu.memory_space<vmem>>, %arg8: memref<32x32xbf16, #tpu.memory_space<vmem>>, %arg9: memref<32x1xf32, #tpu.memory_space<vmem>>, %arg10: memref<32x128xf32, #tpu.memory_space<vmem>>) attributes {dimension_semantics = [#tpu.dimension_semantics<arbitrary>], iteration_bounds = array<i64: 1>, scalar_prefetch = 0 : i64, scratch_operands = 0 : i64, tpu.core_type = #tpu.core_type<tc>, window_params = [{pipeline_mode = #tpu.pipeline_mode<synchronous>, transform_indices = @transform_0, window_bounds = array<i64: 128, 128>}, {pipeline_mode = #tpu.pipeline_mode<synchronous>, transform_indices = @transform_1, window_bounds = array<i64: 128, 128>}, {pipeline_mode = #tpu.pipeline_mode<synchronous>, transform_indices = @transform_2, window_bounds = array<i64: 16, 128>}, {pipeline_mode = #tpu.pipeline_mode<synchronous>, transform_indices = @transform_3, window_bounds = array<i64: 32, 16>}, {pipeline_mode = #tpu.pipeline_mode<synchronous>, transform_indices = @transform_4, window_bounds = array<i64: 32, 1>}, {pipeline_mode = #tpu.pipeline_mode<synchronous>, transform_indices = @transform_5, window_bounds = array<i64: 32, 32>}, {pipeline_mode = #tpu.pipeline_mode<synchronous>, transform_indices = @transform_6, window_bounds = array<i64: 32, 1>}, {pipeline_mode = #tpu.pipeline_mode<synchronous>, transform_indices = @transform_7, window_bounds = array<i64: 32, 32>}, {pipeline_mode = #tpu.pipeline_mode<synchronous>, transform_indices = @transform_8, window_bounds = array<i64: 32, 1>}, {pipeline_mode = #tpu.pipeline_mode<synchronous>, transform_indices = @transform_9, window_bounds = array<i64: 32, 128>}]} {
    %c0 = arith.constant 0 : index
    %c0_0 = arith.constant 0 : index
    %0 = vector.load %arg1[%c0, %c0_0] : memref<128x128xbf16, #tpu.memory_space<vmem>>, vector<128x128xbf16>
    %c0_1 = arith.constant 0 : index
    %c0_2 = arith.constant 0 : index
    %1 = vector.load %arg2[%c0_1, %c0_2] : memref<128x128xbf16, #tpu.memory_space<vmem>>, vector<128x128xbf16>
    %c0_3 = arith.constant 0 : index
    %c0_4 = arith.constant 0 : index
    %2 = vector.load %arg3[%c0_3, %c0_4] : memref<16x128xbf16, #tpu.memory_space<vmem>>, vector<16x128xbf16>
    %c0_5 = arith.constant 0 : index
    %c0_6 = arith.constant 0 : index
    %3 = vector.load %arg4[%c0_5, %c0_6] : memref<32x16xbf16, #tpu.memory_space<vmem>>, vector<32x16xbf16>
    %cst = arith.constant dense<0.000000e+00> : vector<32x128xf32>
    %4 = tpu.matmul %3, %2, %cst {dimension_numbers = #tpu.dot_dimension_numbers<[1], [0], [0], [1], [0, 0, 1, 1], [], []>} : vector<32x16xbf16>, vector<16x128xbf16>, vector<32x128xf32> -> vector<32x128xf32>
    %5 = arith.truncf %4 : vector<32x128xf32> to vector<32x128xbf16>
    %cst_7 = arith.constant dense<0.000000e+00> : vector<32x128xf32>
    %6 = tpu.matmul %5, %0, %cst_7 {dimension_numbers = #tpu.dot_dimension_numbers<[1], [0], [0], [1], [0, 0, 1, 1], [], []>} : vector<32x128xbf16>, vector<128x128xbf16>, vector<32x128xf32> -> vector<32x128xf32>
    %c0_8 = arith.constant 0 : index
    %c0_9 = arith.constant 0 : index
    %7 = vector.load %arg5[%c0_8, %c0_9] : memref<32x1xf32, #tpu.memory_space<vmem>>, vector<32x1xf32>
    %8 = vector.broadcast %7 : vector<32x1xf32> to vector<32x128xf32>
    %9 = arith.addf %6, %8 : vector<32x128xf32>
    %cst_10 = arith.constant 0.000000e+00 : f32
    %10 = vector.broadcast %cst_10 : f32 to vector<32x128xf32>
    %11 = arith.maximumf %9, %10 : vector<32x128xf32>
    %12 = arith.truncf %11 : vector<32x128xf32> to vector<32x128xbf16>
    %c0_11 = arith.constant 0 : index
    %c0_12 = arith.constant 0 : index
    %13 = vector.load %arg6[%c0_11, %c0_12] : memref<32x32xbf16, #tpu.memory_space<vmem>>, vector<32x32xbf16>
    %cst_13 = arith.constant dense<0.000000e+00> : vector<32x128xf32>
    %14 = tpu.matmul %13, %12, %cst_13 {dimension_numbers = #tpu.dot_dimension_numbers<[1], [0], [0], [1], [0, 0, 1, 1], [], []>} : vector<32x32xbf16>, vector<32x128xbf16>, vector<32x128xf32> -> vector<32x128xf32>
    %15 = arith.truncf %14 : vector<32x128xf32> to vector<32x128xbf16>
    %cst_14 = arith.constant dense<0.000000e+00> : vector<32x128xf32>
    %16 = tpu.matmul %15, %0, %cst_14 {dimension_numbers = #tpu.dot_dimension_numbers<[1], [0], [0], [1], [0, 0, 1, 1], [], []>} : vector<32x128xbf16>, vector<128x128xbf16>, vector<32x128xf32> -> vector<32x128xf32>
    %c0_15 = arith.constant 0 : index
    %c0_16 = arith.constant 0 : index
    %17 = vector.load %arg7[%c0_15, %c0_16] : memref<32x1xf32, #tpu.memory_space<vmem>>, vector<32x1xf32>
    %18 = vector.broadcast %17 : vector<32x1xf32> to vector<32x128xf32>
    %19 = arith.addf %16, %18 : vector<32x128xf32>
    %cst_17 = arith.constant 0.000000e+00 : f32
    %20 = vector.broadcast %cst_17 : f32 to vector<32x128xf32>
    %21 = arith.maximumf %19, %20 : vector<32x128xf32>
    %cst_18 = arith.constant 1.000000e-01 : f32
    %22 = vector.broadcast %cst_18 : f32 to vector<32x128xf32>
    %23 = arith.mulf %22, %21 : vector<32x128xf32>
    %24 = arith.truncf %21 : vector<32x128xf32> to vector<32x128xbf16>
    %cst_19 = arith.constant dense<0.000000e+00> : vector<32x128xf32>
    %25 = tpu.matmul %24, %1, %cst_19 {dimension_numbers = #tpu.dot_dimension_numbers<[1], [0], [0], [1], [0, 0, 1, 1], [], []>} : vector<32x128xbf16>, vector<128x128xbf16>, vector<32x128xf32> -> vector<32x128xf32>
    %26 = arith.addf %25, %23 : vector<32x128xf32>
    %27 = arith.truncf %26 : vector<32x128xf32> to vector<32x128xbf16>
    %cst_20 = arith.constant dense<0.000000e+00> : vector<32x128xf32>
    %28 = tpu.matmul %27, %1, %cst_20 {dimension_numbers = #tpu.dot_dimension_numbers<[1], [0], [0], [1], [0, 0, 1, 1], [], []>} : vector<32x128xbf16>, vector<128x128xbf16>, vector<32x128xf32> -> vector<32x128xf32>
    %29 = arith.addf %28, %23 : vector<32x128xf32>
    %30 = arith.truncf %29 : vector<32x128xf32> to vector<32x128xbf16>
    %cst_21 = arith.constant dense<0.000000e+00> : vector<32x128xf32>
    %31 = tpu.matmul %30, %1, %cst_21 {dimension_numbers = #tpu.dot_dimension_numbers<[1], [0], [0], [1], [0, 0, 1, 1], [], []>} : vector<32x128xbf16>, vector<128x128xbf16>, vector<32x128xf32> -> vector<32x128xf32>
    %32 = arith.addf %31, %23 : vector<32x128xf32>
    %33 = arith.truncf %32 : vector<32x128xf32> to vector<32x128xbf16>
    %cst_22 = arith.constant dense<0.000000e+00> : vector<32x128xf32>
    %34 = tpu.matmul %33, %1, %cst_22 {dimension_numbers = #tpu.dot_dimension_numbers<[1], [0], [0], [1], [0, 0, 1, 1], [], []>} : vector<32x128xbf16>, vector<128x128xbf16>, vector<32x128xf32> -> vector<32x128xf32>
    %35 = arith.addf %34, %23 : vector<32x128xf32>
    %36 = arith.truncf %35 : vector<32x128xf32> to vector<32x128xbf16>
    %cst_23 = arith.constant dense<0.000000e+00> : vector<32x128xf32>
    %37 = tpu.matmul %36, %1, %cst_23 {dimension_numbers = #tpu.dot_dimension_numbers<[1], [0], [0], [1], [0, 0, 1, 1], [], []>} : vector<32x128xbf16>, vector<128x128xbf16>, vector<32x128xf32> -> vector<32x128xf32>
    %38 = arith.addf %37, %23 : vector<32x128xf32>
    %39 = arith.truncf %38 : vector<32x128xf32> to vector<32x128xbf16>
    %cst_24 = arith.constant dense<0.000000e+00> : vector<32x128xf32>
    %40 = tpu.matmul %39, %1, %cst_24 {dimension_numbers = #tpu.dot_dimension_numbers<[1], [0], [0], [1], [0, 0, 1, 1], [], []>} : vector<32x128xbf16>, vector<128x128xbf16>, vector<32x128xf32> -> vector<32x128xf32>
    %41 = arith.addf %40, %23 : vector<32x128xf32>
    %42 = arith.truncf %41 : vector<32x128xf32> to vector<32x128xbf16>
    %cst_25 = arith.constant dense<0.000000e+00> : vector<32x128xf32>
    %43 = tpu.matmul %42, %1, %cst_25 {dimension_numbers = #tpu.dot_dimension_numbers<[1], [0], [0], [1], [0, 0, 1, 1], [], []>} : vector<32x128xbf16>, vector<128x128xbf16>, vector<32x128xf32> -> vector<32x128xf32>
    %44 = arith.addf %43, %23 : vector<32x128xf32>
    %45 = arith.truncf %44 : vector<32x128xf32> to vector<32x128xbf16>
    %cst_26 = arith.constant dense<0.000000e+00> : vector<32x128xf32>
    %46 = tpu.matmul %45, %1, %cst_26 {dimension_numbers = #tpu.dot_dimension_numbers<[1], [0], [0], [1], [0, 0, 1, 1], [], []>} : vector<32x128xbf16>, vector<128x128xbf16>, vector<32x128xf32> -> vector<32x128xf32>
    %47 = arith.addf %46, %23 : vector<32x128xf32>
    %48 = arith.truncf %47 : vector<32x128xf32> to vector<32x128xbf16>
    %cst_27 = arith.constant dense<0.000000e+00> : vector<32x128xf32>
    %49 = tpu.matmul %48, %1, %cst_27 {dimension_numbers = #tpu.dot_dimension_numbers<[1], [0], [0], [1], [0, 0, 1, 1], [], []>} : vector<32x128xbf16>, vector<128x128xbf16>, vector<32x128xf32> -> vector<32x128xf32>
    %50 = arith.addf %49, %23 : vector<32x128xf32>
    %51 = arith.truncf %50 : vector<32x128xf32> to vector<32x128xbf16>
    %cst_28 = arith.constant dense<0.000000e+00> : vector<32x128xf32>
    %52 = tpu.matmul %51, %1, %cst_28 {dimension_numbers = #tpu.dot_dimension_numbers<[1], [0], [0], [1], [0, 0, 1, 1], [], []>} : vector<32x128xbf16>, vector<128x128xbf16>, vector<32x128xf32> -> vector<32x128xf32>
    %53 = arith.addf %52, %23 : vector<32x128xf32>
    %c0_29 = arith.constant 0 : index
    %c0_30 = arith.constant 0 : index
    %54 = vector.load %arg8[%c0_29, %c0_30] : memref<32x32xbf16, #tpu.memory_space<vmem>>, vector<32x32xbf16>
    %55 = arith.truncf %53 : vector<32x128xf32> to vector<32x128xbf16>
    %cst_31 = arith.constant dense<0.000000e+00> : vector<32x128xf32>
    %56 = tpu.matmul %54, %55, %cst_31 {dimension_numbers = #tpu.dot_dimension_numbers<[1], [0], [0], [1], [0, 0, 1, 1], [], []>} : vector<32x32xbf16>, vector<32x128xbf16>, vector<32x128xf32> -> vector<32x128xf32>
    %c0_32 = arith.constant 0 : index
    %c0_33 = arith.constant 0 : index
    %57 = vector.load %arg9[%c0_32, %c0_33] : memref<32x1xf32, #tpu.memory_space<vmem>>, vector<32x1xf32>
    %58 = vector.broadcast %57 : vector<32x1xf32> to vector<32x128xf32>
    %59 = arith.addf %56, %58 : vector<32x128xf32>
    %cst_34 = arith.constant dense<0xFF800000> : vector<128xf32>
    %60 = vector.multi_reduction <maximumf>, %59, %cst_34 [0] : vector<32x128xf32> to vector<128xf32>
    %61 = vector.shape_cast %60 : vector<128xf32> to vector<1x128xf32>
    %62 = vector.broadcast %61 : vector<1x128xf32> to vector<32x128xf32>
    %63 = arith.subf %59, %62 : vector<32x128xf32>
    %64 = math.exp %63 : vector<32x128xf32>
    %cst_35 = arith.constant dense<0.000000e+00> : vector<128xf32>
    %65 = vector.multi_reduction <add>, %64, %cst_35 [0] : vector<32x128xf32> to vector<128xf32>
    %66 = vector.shape_cast %65 : vector<128xf32> to vector<1x128xf32>
    %67 = math.log %66 : vector<1x128xf32>
    %68 = vector.broadcast %67 : vector<1x128xf32> to vector<32x128xf32>
    %69 = arith.subf %63, %68 : vector<32x128xf32>
    %c0_36 = arith.constant 0 : index
    %c0_37 = arith.constant 0 : index
    %70 = vector.load %arg10[%c0_36, %c0_37] : memref<32x128xf32, #tpu.memory_space<vmem>>, vector<32x128xf32>
    tpu.vector_store %arg10[%c0_36, %c0_37], %69 {strides = array<i32>} : memref<32x128xf32, #tpu.memory_space<vmem>>, vector<32x128xf32>,
    return
  }
  func.func @transform_0(%arg0: i32) -> (i32, i32) {
    %c0_i32 = arith.constant 0 : i32
    %c0_i32_0 = arith.constant 0 : i32
    %c0_i32_1 = arith.constant 0 : i32
    return %c0_i32, %c0_i32_0 : i32, i32
  }
  func.func @transform_1(%arg0: i32) -> (i32, i32) {
    %c0_i32 = arith.constant 0 : i32
    %c0_i32_0 = arith.constant 0 : i32
    %c0_i32_1 = arith.constant 0 : i32
    return %c0_i32, %c0_i32_0 : i32, i32
  }
  func.func @transform_2(%arg0: i32) -> (i32, i32) {
    %c0_i32 = arith.constant 0 : i32
    %c0_i32_0 = arith.constant 0 : i32
    %c0_i32_1 = arith.constant 0 : i32
    return %c0_i32, %c0_i32_0 : i32, i32
  }
  func.func @transform_3(%arg0: i32) -> (i32, i32) {
    %c0_i32 = arith.constant 0 : i32
    %c0_i32_0 = arith.constant 0 : i32
    %c0_i32_1 = arith.constant 0 : i32
    return %c0_i32, %c0_i32_0 : i32, i32
  }
  func.func @transform_4(%arg0: i32) -> (i32, i32) {
    %c0_i32 = arith.constant 0 : i32
    %c0_i32_0 = arith.constant 0 : i32
    %c0_i32_1 = arith.constant 0 : i32
    return %c0_i32, %c0_i32_0 : i32, i32
  }
  func.func @transform_5(%arg0: i32) -> (i32, i32) {
    %c0_i32 = arith.constant 0 : i32
    %c0_i32_0 = arith.constant 0 : i32
    %c0_i32_1 = arith.constant 0 : i32
    return %c0_i32, %c0_i32_0 : i32, i32
  }
  func.func @transform_6(%arg0: i32) -> (i32, i32) {
    %c0_i32 = arith.constant 0 : i32
    %c0_i32_0 = arith.constant 0 : i32
    %c0_i32_1 = arith.constant 0 : i32
    return %c0_i32, %c0_i32_0 : i32, i32
  }
  func.func @transform_7(%arg0: i32) -> (i32, i32) {
    %c0_i32 = arith.constant 0 : i32
    %c0_i32_0 = arith.constant 0 : i32
    %c0_i32_1 = arith.constant 0 : i32
    return %c0_i32, %c0_i32_0 : i32, i32
  }
  func.func @transform_8(%arg0: i32) -> (i32, i32) {
    %c0_i32 = arith.constant 0 : i32
    %c0_i32_0 = arith.constant 0 : i32
    %c0_i32_1 = arith.constant 0 : i32
    return %c0_i32, %c0_i32_0 : i32, i32
  }
  func.func @transform_9(%arg0: i32) -> (i32, i32) {
    %c0_i32 = arith.constant 0 : i32
    %c0_i32_0 = arith.constant 0 : i32
    %c0_i32_1 = arith.constant 0 : i32
    return %c0_i32, %c0_i32_0 : i32, i32
  }
}

</mosaic_0001>

<bundles_post_ra>
// kernel: appnp2bn_fused.1
= control target key start
LH: loop header
LB: loop body
LE: loop exit
PB: predicated region body
PF: predicated region fallthrough
CT: control target
= control target key end

     0   :  { %14 = vsyncpa [#allocation3], 0  ;;  %s2100_s0 = inlined_call_operand.vmem [shape: bf16[128,128], index: 0, kind: input, shape index: {}]   ;;  %s2101_s1 = inlined_call_operand.hbm [shape: bf16[128,128], index: 1, kind: input, shape index: {}]   ;;  %s2102_s2 = inlined_call_operand.vmem [shape: bf16[16,128], index: 2, kind: input, shape index: {}]   ;;  %s2103_s3 = inlined_call_operand.vmem [shape: bf16[32,16], index: 3, kind: input, shape index: {}]   ;;  %s2104_s4 = inlined_call_operand.vmem [shape: f32[32,1], index: 4, kind: input, shape index: {}]   ;;  %s2105_s5 = inlined_call_operand.vmem [shape: bf16[32,32], index: 5, kind: input, shape index: {}]   ;;  %s2106_s6 = inlined_call_operand.vmem [shape: f32[32,1], index: 6, kind: input, shape index: {}]   ;;  %s2107_s7 = inlined_call_operand.vmem [shape: bf16[32,32], index: 7, kind: input, shape index: {}]   ;;  %s2108_s8 = inlined_call_operand.vmem [shape: f32[32,1], index: 8, kind: input, shape index: {}]   ;;  %s2109_s9 = inlined_call_operand.hbm [shape: f32[32,128], index: 9, kind: output, shape index: {}]  }
   0x1   :  { %15 = vsyncpa [#allocation4], 0  ;;  %s1662_s30 = smov [#allocation2]   ;;  %s1614_s13 = scalar_lea.hbm %s2101_s1, 1024 }
   0x2   :  { %s23_s10 = sshll.u32 %s1662_s30, 4  ;;  %p1615_p0 = scmp.ne.s32.totalorder %s2101_s1, %s1614_s13  ;;  %s24_s10 = int_to_ptr.vmem [resolvable:$true] %s23_s10 }
   0x3   :  { %p1618_p1 = scmp.lt.u32.totalorder %s1614_s13, %s2101_s1 }
   0x5   :  { %p1620_p2 = pnand %p1618_p1, %p1615_p0 }
   0x7   :  { %1623 = shalt.err (!%p1620_p2)
}
   0x8   :  { %s1624_s18 = scalar_lea.vmem %s24_s10, 1024  ;;  %p1629_p4 = scmp.lt.s32.totalorder %s24_s10, %s24_s10 }
   0x9   :  { %p1625_p3 = scmp.ne.s32.totalorder %s24_s10, %s1624_s18  ;;  %p1630_p5 = scmp.lt.s32.totalorder %s1624_s18, %s1624_s18 }
   0xb   :  { %p1631_p6 = por %p1630_p5, %p1629_p4 }
   0xd   :  { %p1632_p7 = pnand %p1631_p6, %p1625_p3 }
   0xf   :  { %1635 = shalt.err (!%p1632_p7)
}
  0x10   :  { %s1663_s19 = smov 64   ;;  %s1664_s20 = smov 4  }
  0x11   :  { %29 = dma.hbm_to_vmem [thread:$0]  %s2101_s1, 1024, %s24_s10, [#allocation3], %s1663_s19, %s1663_s19, %s1664_s20  }
  0x12   :  { %1658 = dma.done.wait [#allocation3], 1024  }
  0x13   :  { %1659 = vsyncadd [#allocation3], 4294966272  ;;  %v1581_v0 = vld [vmem:[%s2102_s2] sm:$0xff]   ;;  %vm102_vm0 = vcmask 130048   ;;  %v1583_v2 = vld [vmem:[%s2103_s3 + $0x8] sm:$0xff]   ;;  %v1665_v13 = vmov 0  }
  0x14   :  { %v1582_v1 = vld [vmem:[%s2103_s3] sm:$0xff]   ;;  %1310 = vmatprep.subr.bf16.mxu0 %v1581_v0  ;;  %v1748_v4 = vld [vmem:[%s2100_s0 + $0x8] sm:$0xff]   ;;  %v1756_v5 = vld [vmem:[%s2100_s0 + $0x10] sm:$0xff]   ;;  %1579 = vset.pattern.permute.xlu0 %v1665_v13  ;;  %vm301_vm1 = vcmask 261120  }
  0x15   :  { %1311 = vmatpush3.bf16.msra.mxu0 %v1581_v0  ;;  %1312 = vmatprep.mubr.msk.bf16.mxu0 %vm102_vm0, %v1582_v1  ;;  %v1743_v3 = vld [vmem:[%s2100_s0] sm:$0xff]   ;;  %v1761_v6 = vld [vmem:[%s2100_s0 + $0x18] sm:$0xff]   ;;  %v1777_v8 = vld [vmem:[%s2100_s0 + $0x28] sm:$0xff]  }
  0x16   :  { %1316 = vmatprep.subr.bf16.mxu1 %v1743_v3  ;;  %v1768_v7 = vld [vmem:[%s2100_s0 + $0x20] sm:$0xff]   ;;  %v1784_v9 = vld [vmem:[%s2100_s0 + $0x30] sm:$0xff]   ;;  %v1792_v10 = vld [vmem:[%s2100_s0 + $0x38] sm:$0xff]   ;;  %1580 = vset.pattern.permute.xlu1 %v1665_v13 }
  0x17   :  { %1317 = vmatpush3.bf16.msra.mxu1 %v1743_v3  ;;  %v160_v11 = vld [vmem:[%s2104_s4] sm:$0xff]  ;;  %v162_v12 = vld [vmem:[%s2104_s4 + $0x10] sm:$0xff]  ;;  %v161_v14 = vld [vmem:[%s2104_s4 + $0x8] sm:$0xff] }
  0x18   :  { %1313 = vmatmul.mubr.msk.bf16.vlgmr.msra.gmra.mrb[0].mxu0 %vm102_vm0, %v1583_v2  ;;  %1318 = vmatprep.subr.bf16.mxu1 %v1748_v4  ;;  %v163_v15 = vld [vmem:[%s2104_s4 + $0x18] sm:$0xff]  ;;  %v359_v16 = vld [vmem:[%s2106_s6] sm:$0xff]  ;;  %v360_v17 = vld [vmem:[%s2106_s6 + $0x8] sm:$0xff] }
  0x19   :  { %166 = vperm.xlu0 %1579, %v160_v11   ;;  %176 = vperm.xlu1 %1580, %v162_v12   ;;  %v361_v18 = vld [vmem:[%s2106_s6 + $0x10] sm:$0xff]  ;;  %v362_v19 = vld [vmem:[%s2106_s6 + $0x18] sm:$0xff]  ;;  %v1004_v20 = vld [vmem:[%s2108_s8] sm:$0xff] }
  0x1a   :  { %v1005_v21 = vld [vmem:[%s2108_s8 + $0x8] sm:$0xff]  ;;  %v1006_v22 = vld [vmem:[%s2108_s8 + $0x10] sm:$0xff]  ;;  %v1007_v23 = vld [vmem:[%s2108_s8 + $0x18] sm:$0xff] }
  0x1b   :  { %1319 = vmatpush3.bf16.msra.mxu1 %v1748_v4  ;;  %v1592_v30 = vld [vmem:[%s2105_s5] sm:$0xff]   ;;  %v1593_v49 = vld [vmem:[%s2105_s5 + $0x8] sm:$0xff]   ;;  %v1864_v52 = vld [vmem:[#allocation2 + $0x10] sm:$0xff]  }
  0x1c   :  { %1320 = vmatprep.subr.bf16.mxu1 %v1756_v5  ;;  %1340 = vmatprep.mubr.msk.bf16.mxu0 %vm301_vm1, %v1592_v30  ;;  %v1856_v50 = vld [vmem:[#allocation2] sm:$0xff]   ;;  %v1858_v51 = vld [vmem:[#allocation2 + $0x8] sm:$0xff]   ;;  %v1868_v53 = vld [vmem:[#allocation2 + $0x18] sm:$0xff]  }
  0x1d   :  { %171 = vperm.xlu0 %1579, %v161_v14   ;;  %181 = vperm.xlu1 %1580, %v163_v15   ;;  %v1872_v54 = vld [vmem:[#allocation2 + $0x20] sm:$0xff]   ;;  %v1876_v55 = vld [vmem:[#allocation2 + $0x28] sm:$0xff]   ;;  %v1892_v62 = vld [vmem:[#allocation2 + $0x30] sm:$0xff]  }
  0x1e   :  { %v1898_v63 = vld [vmem:[#allocation2 + $0x38] sm:$0xff]  }
  0x1f   :  { %1321 = vmatpush3.bf16.msra.mxu1 %v1756_v5 }
  0x20   :  { %1322 = vmatprep.subr.bf16.mxu1 %v1761_v6 }
  0x21   :  { %365 = vperm.xlu0 %1579, %v359_v16   ;;  %370 = vperm.xlu1 %1580, %v360_v17  }
  0x23   :  { %1323 = vmatpush3.bf16.msra.mxu1 %v1761_v6 }
  0x24   :  { %1324 = vmatprep.subr.bf16.mxu1 %v1768_v7 }
  0x25   :  { %375 = vperm.xlu0 %1579, %v361_v18   ;;  %380 = vperm.xlu1 %1580, %v362_v19  }
  0x27   :  { %1325 = vmatpush3.bf16.msra.mxu1 %v1768_v7 }
  0x28   :  { %1326 = vmatprep.subr.bf16.mxu1 %v1777_v8 }
  0x29   :  { %1010 = vperm.xlu0 %1579, %v1004_v20   ;;  %1015 = vperm.xlu1 %1580, %v1005_v21  }
  0x2b   :  { %1327 = vmatpush3.bf16.msra.mxu1 %v1777_v8 }
  0x2c   :  { %1328 = vmatprep.subr.bf16.mxu1 %v1784_v9 }
  0x2d   :  { %1020 = vperm.xlu0 %1579, %v1006_v22   ;;  %1025 = vperm.xlu1 %1580, %v1007_v23  }
  0x2f   :  { %1329 = vmatpush3.bf16.msra.mxu1 %v1784_v9 }
  0x30   :  { %1330 = vmatprep.subr.bf16.mxu1 %v1792_v10 }
  0x33   :  { %1331 = vmatpush3.bf16.msra.mxu1 %v1792_v10 }
  0x34   :  { %1364 = vmatprep.subr.bf16.mxu1 %v1856_v50 }
  0x98   :  { %v177_v31 = vpop.permute.xlu1 %176  ;;  %v167_v32 = vpop.permute.xlu0 %166 }
  0x9c   :  { %v182_v36 = vpop.permute.xlu1 %181  ;;  %v172_v39 = vpop.permute.xlu0 %171 }
  0xa0   :  { %v366_v0 = vpop.permute.xlu0 %365  ;;  %v371_v1 = vpop.permute.xlu1 %370 }
  0xa4   :  { %v376_v2 = vpop.permute.xlu0 %375 }
  0xeb   :  { %v1314_v24 = vpop.f32.mrb[0].mxu0 }
  0xec   :  { %v143_v25 = vpop.f32.mrb[1].mxu0 }
  0xed   :  { %v1315_v26 = vpop.f32.mrb[2].mxu0 }
  0xee   :  { %v159_v27 = vpack.c.bf16 %v1315_v26, %v1314_v24  ;;  %v146_v28 = vpop.f32.mrb[3].mxu0 }
  0xef   :  { %v158_v29 = vpack.c.bf16 %v146_v28, %v143_v25 }
  0xf1   :  { %1332 = vmatprep.mubr.bf16.mxu1 %v158_v29 }
  0xf2   :  { %1333 = vmatmul.mubr.bf16.vlgmr.msra.gmra.mrb[0].mxu1 %v159_v27 }
  0xf3   :  { %1365 = vmatpush3.bf16.msra.mxu1 %v1856_v50 }
  0xf4   :  { %1366 = vmatprep.subr.bf16.mxu1 %v1858_v51 }
  0xf7   :  { %1367 = vmatpush3.bf16.msra.mxu1 %v1858_v51 }
  0xf8   :  { %1368 = vmatprep.subr.bf16.mxu1 %v1864_v52 }
  0xfb   :  { %1369 = vmatpush3.bf16.msra.mxu1 %v1864_v52 }
  0xfc   :  { %1370 = vmatprep.subr.bf16.mxu1 %v1868_v53 }
  0xff   :  { %1371 = vmatpush3.bf16.msra.mxu1 %v1868_v53 }
 0x100   :  { %1372 = vmatprep.subr.bf16.mxu1 %v1872_v54 }
 0x103   :  { %1373 = vmatpush3.bf16.msra.mxu1 %v1872_v54 }
 0x104   :  { %1374 = vmatprep.subr.bf16.mxu1 %v1876_v55 }
 0x107   :  { %1375 = vmatpush3.bf16.msra.mxu1 %v1876_v55 }
 0x108   :  { %1376 = vmatprep.subr.bf16.mxu1 %v1892_v62 }
 0x10b   :  { %1377 = vmatpush3.bf16.msra.mxu1 %v1892_v62 }
 0x10c   :  { %1378 = vmatprep.subr.bf16.mxu1 %v1898_v63 }
 0x10f   :  { %1379 = vmatpush3.bf16.msra.mxu1 %v1898_v63 }
 0x110   :  { %1404 = vmatprep.subr.bf16.mxu1 %v1856_v50 }
 0x1c5   :  { %v1334_v33 = vpop.f32.mrb[0].mxu1 }
 0x1c6   :  { %v275_v34 = vadd.f32 %v1334_v33, %v177_v31  ;;  %v266_v35 = vpop.f32.mrb[1].mxu1 }
 0x1c7   :  { %v267_v37 = vadd.f32 %v266_v35, %v167_v32  ;;  %v1335_v38 = vpop.f32.mrb[2].mxu1 }
 0x1c8   :  { %v278_v40 = vadd.f32 %v1335_v38, %v182_v36  ;;  %v269_v41 = vpop.f32.mrb[3].mxu1  ;;  %v283_v43 = vmax.f32 %v275_v34, 0.0 }
 0x1c9   :  { %v270_v42 = vadd.f32 %v269_v41, %v172_v39  ;;  %v281_v45 = vmax.f32 %v267_v37, 0.0 }
 0x1ca   :  { %v284_v44 = vmax.f32 %v278_v40, 0.0 }
 0x1cb   :  { %v282_v46 = vmax.f32 %v270_v42, 0.0 }
 0x1cc   :  { %v286_v47 = vpack.c.bf16 %v284_v44, %v283_v43 }
 0x1cd   :  { %v285_v48 = vpack.c.bf16 %v282_v46, %v281_v45 }
 0x1cf   :  { %1336 = vmatprep.subr.bf16.mxu0 %v285_v48 }
 0x1d0   :  { %1337 = vmatpush3.bf16.msra.mxu0 %v285_v48 }
 0x1d1   :  { %1338 = vmatprep.subr.bf16.mxu0 %v286_v47 }
 0x1d4   :  { %1339 = vmatpush3.bf16.msra.mxu0 %v286_v47 }
 0x1d5   :  { %1344 = vmatprep.subr.bf16.mxu0 %v1743_v3 }
 0x1d7   :  { %1341 = vmatmul.mubr.msk.bf16.vlgmr.msra.gmra.mrb[4].mxu0 %vm301_vm1, %v1593_v49 }
 0x1d8   :  { %1345 = vmatpush3.bf16.msra.mxu0 %v1743_v3 }
 0x1d9   :  { %1346 = vmatprep.subr.bf16.mxu0 %v1748_v4 }
 0x1dc   :  { %1347 = vmatpush3.bf16.msra.mxu0 %v1748_v4 }
 0x1dd   :  { %1348 = vmatprep.subr.bf16.mxu0 %v1756_v5 }
 0x1e0   :  { %1349 = vmatpush3.bf16.msra.mxu0 %v1756_v5 }
 0x1e1   :  { %1350 = vmatprep.subr.bf16.mxu0 %v1761_v6 }
 0x1e4   :  { %1351 = vmatpush3.bf16.msra.mxu0 %v1761_v6  ;;  %v381_v6 = vpop.permute.xlu1 %380 }
 0x1e5   :  { %1352 = vmatprep.subr.bf16.mxu0 %v1768_v7 }
 0x1e8   :  { %1353 = vmatpush3.bf16.msra.mxu0 %v1768_v7 }
 0x1e9   :  { %1354 = vmatprep.subr.bf16.mxu0 %v1777_v8 }
 0x1ec   :  { %1355 = vmatpush3.bf16.msra.mxu0 %v1777_v8 }
 0x1ed   :  { %1356 = vmatprep.subr.bf16.mxu0 %v1784_v9 }
 0x1f0   :  { %1357 = vmatpush3.bf16.msra.mxu0 %v1784_v9 }
 0x1f1   :  { %1358 = vmatprep.subr.bf16.mxu0 %v1792_v10 }
 0x1f4   :  { %1359 = vmatpush3.bf16.msra.mxu0 %v1792_v10 }
 0x1f5   :  { %1384 = vmatprep.subr.bf16.mxu0 %v1856_v50 }
 0x2aa   :  { %v1342_v56 = vpop.f32.mrb[4].mxu0 }
 0x2ab   :  { %v342_v57 = vpop.f32.mrb[5].mxu0 }
 0x2ac   :  { %v1343_v58 = vpop.f32.mrb[6].mxu0 }
 0x2ad   :  { %v358_v59 = vpack.c.bf16 %v1343_v58, %v1342_v56  ;;  %v345_v60 = vpop.f32.mrb[7].mxu0 }
 0x2ae   :  { %v357_v61 = vpack.c.bf16 %v345_v60, %v342_v57 }
 0x2b0   :  { %1360 = vmatprep.mubr.bf16.mxu0 %v357_v61 }
 0x2b1   :  { %1361 = vmatmul.mubr.bf16.vlgmr.msra.gmra.mrb[8].mxu0 %v358_v59 }
 0x2b2   :  { %1385 = vmatpush3.bf16.msra.mxu0 %v1856_v50 }
 0x2b3   :  { %1386 = vmatprep.subr.bf16.mxu0 %v1858_v51 }
 0x2b6   :  { %1387 = vmatpush3.bf16.msra.mxu0 %v1858_v51 }
 0x2b7   :  { %1388 = vmatprep.subr.bf16.mxu0 %v1864_v52 }
 0x2ba   :  { %1389 = vmatpush3.bf16.msra.mxu0 %v1864_v52 }
 0x2bb   :  { %1390 = vmatprep.subr.bf16.mxu0 %v1868_v53 }
 0x2be   :  { %1391 = vmatpush3.bf16.msra.mxu0 %v1868_v53 }
 0x2bf   :  { %1392 = vmatprep.subr.bf16.mxu0 %v1872_v54 }
 0x2c2   :  { %1393 = vmatpush3.bf16.msra.mxu0 %v1872_v54 }
 0x2c3   :  { %1394 = vmatprep.subr.bf16.mxu0 %v1876_v55 }
 0x2c6   :  { %1395 = vmatpush3.bf16.msra.mxu0 %v1876_v55 }
 0x2c7   :  { %1396 = vmatprep.subr.bf16.mxu0 %v1892_v62 }
 0x2ca   :  { %1397 = vmatpush3.bf16.msra.mxu0 %v1892_v62 }
 0x2cb   :  { %1398 = vmatprep.subr.bf16.mxu0 %v1898_v63 }
 0x2ce   :  { %1399 = vmatpush3.bf16.msra.mxu0 %v1898_v63 }
 0x2cf   :  { %1424 = vmatprep.subr.bf16.mxu0 %v1856_v50 }
 0x384   :  { %v1362_v3 = vpop.f32.mrb[8].mxu0 }
 0x385   :  { %v426_v4 = vadd.f32 %v1362_v3, %v376_v2  ;;  %v417_v5 = vpop.f32.mrb[9].mxu0 }
 0x386   :  { %v418_v7 = vadd.f32 %v417_v5, %v366_v0  ;;  %v1363_v8 = vpop.f32.mrb[10].mxu0 }
 0x387   :  { %v429_v9 = vadd.f32 %v1363_v8, %v381_v6  ;;  %v420_v10 = vpop.f32.mrb[11].mxu0  ;;  %v434_v12 = vmax.f32 %v426_v4, 0.0 }
 0x388   :  { %v421_v11 = vadd.f32 %v420_v10, %v371_v1  ;;  %v432_v14 = vmax.f32 %v418_v7, 0.0 }
 0x389   :  { %v435_v13 = vmax.f32 %v429_v9, 0.0  ;;  %v1922_v19 = vmul.f32 0.1, %v434_v12 }
 0x38a   :  { %v433_v15 = vmax.f32 %v421_v11, 0.0  ;;  %v1926_v22 = vmul.f32 0.1, %v432_v14 }
 0x38b   :  { %v441_v16 = vpack.c.bf16 %v435_v13, %v434_v12  ;;  %v1924_v20 = vmul.f32 0.1, %v435_v13 }
 0x38c   :  { %v440_v17 = vpack.c.bf16 %v433_v15, %v432_v14  ;;  %v1928_v23 = vmul.f32 0.1, %v433_v15 }
 0x38e   :  { %1380 = vmatprep.mubr.bf16.mxu1 %v440_v17 }
 0x38f   :  { %1381 = vmatmul.mubr.bf16.vlgmr.msra.gmra.mrb[4].mxu1 %v441_v16 }
 0x390   :  { %1405 = vmatpush3.bf16.msra.mxu1 %v1856_v50 }
 0x391   :  { %1406 = vmatprep.subr.bf16.mxu1 %v1858_v51 }
 0x394   :  { %1407 = vmatpush3.bf16.msra.mxu1 %v1858_v51 }
 0x395   :  { %1408 = vmatprep.subr.bf16.mxu1 %v1864_v52 }
 0x398   :  { %1409 = vmatpush3.bf16.msra.mxu1 %v1864_v52 }
 0x399   :  { %1410 = vmatprep.subr.bf16.mxu1 %v1868_v53 }
 0x39c   :  { %1411 = vmatpush3.bf16.msra.mxu1 %v1868_v53 }
 0x39d   :  { %1412 = vmatprep.subr.bf16.mxu1 %v1872_v54 }
 0x3a0   :  { %1413 = vmatpush3.bf16.msra.mxu1 %v1872_v54 }
 0x3a1   :  { %1414 = vmatprep.subr.bf16.mxu1 %v1876_v55 }
 0x3a4   :  { %1415 = vmatpush3.bf16.msra.mxu1 %v1876_v55 }
 0x3a5   :  { %1416 = vmatprep.subr.bf16.mxu1 %v1892_v62 }
 0x3a8   :  { %1417 = vmatpush3.bf16.msra.mxu1 %v1892_v62 }
 0x3a9   :  { %1418 = vmatprep.subr.bf16.mxu1 %v1898_v63 }
 0x3ac   :  { %1419 = vmatpush3.bf16.msra.mxu1 %v1898_v63 }
 0x3ad   :  { %1444 = vmatprep.subr.bf16.mxu1 %v1856_v50 }
 0x462   :  { %v1382_v18 = vpop.f32.mrb[4].mxu1 }
 0x463   :  { %v524_v21 = vpop.f32.mrb[5].mxu1  ;;  %v533_v25 = vadd.f32 %v1382_v18, %v1922_v19 }
 0x464   :  { %v1383_v24 = vpop.f32.mrb[6].mxu1  ;;  %v525_v28 = vadd.f32 %v524_v21, %v1926_v22 }
 0x465   :  { %v536_v26 = vadd.f32 %v1383_v24, %v1924_v20  ;;  %v527_v27 = vpop.f32.mrb[7].mxu1 }
 0x466   :  { %v528_v29 = vadd.f32 %v527_v27, %v1928_v23 }
 0x467   :  { %v540_v30 = vpack.c.bf16 %v536_v26, %v533_v25 }
 0x468   :  { %v539_v31 = vpack.c.bf16 %v528_v29, %v525_v28 }
 0x46a   :  { %1400 = vmatprep.mubr.bf16.mxu0 %v539_v31 }
 0x46b   :  { %1401 = vmatmul.mubr.bf16.vlgmr.msra.gmra.mrb[12].mxu0 %v540_v30 }
 0x46c   :  { %1425 = vmatpush3.bf16.msra.mxu0 %v1856_v50 }
 0x46d   :  { %1426 = vmatprep.subr.bf16.mxu0 %v1858_v51 }
 0x470   :  { %1427 = vmatpush3.bf16.msra.mxu0 %v1858_v51 }
 0x471   :  { %1428 = vmatprep.subr.bf16.mxu0 %v1864_v52 }
 0x474   :  { %1429 = vmatpush3.bf16.msra.mxu0 %v1864_v52 }
 0x475   :  { %1430 = vmatprep.subr.bf16.mxu0 %v1868_v53 }
 0x478   :  { %1431 = vmatpush3.bf16.msra.mxu0 %v1868_v53 }
 0x479   :  { %1432 = vmatprep.subr.bf16.mxu0 %v1872_v54 }
 0x47c   :  { %1433 = vmatpush3.bf16.msra.mxu0 %v1872_v54 }
 0x47d   :  { %1434 = vmatprep.subr.bf16.mxu0 %v1876_v55 }
 0x480   :  { %1435 = vmatpush3.bf16.msra.mxu0 %v1876_v55 }
 0x481   :  { %1436 = vmatprep.subr.bf16.mxu0 %v1892_v62 }
 0x484   :  { %1437 = vmatpush3.bf16.msra.mxu0 %v1892_v62 }
 0x485   :  { %1438 = vmatprep.subr.bf16.mxu0 %v1898_v63 }
 0x488   :  { %1439 = vmatpush3.bf16.msra.mxu0 %v1898_v63 }
 0x489   :  { %1464 = vmatprep.subr.bf16.mxu0 %v1856_v50 }
 0x53e   :  { %v1402_v32 = vpop.f32.mrb[12].mxu0 }
 0x53f   :  { %v575_v33 = vpop.f32.mrb[13].mxu0  ;;  %v584_v35 = vadd.f32 %v1402_v32, %v1922_v19 }
 0x540   :  { %v1403_v34 = vpop.f32.mrb[14].mxu0  ;;  %v576_v38 = vadd.f32 %v575_v33, %v1926_v22 }
 0x541   :  { %v587_v36 = vadd.f32 %v1403_v34, %v1924_v20  ;;  %v578_v37 = vpop.f32.mrb[15].mxu0 }
 0x542   :  { %v579_v39 = vadd.f32 %v578_v37, %v1928_v23 }
 0x543   :  { %v591_v40 = vpack.c.bf16 %v587_v36, %v584_v35 }
 0x544   :  { %v590_v41 = vpack.c.bf16 %v579_v39, %v576_v38 }
 0x546   :  { %1420 = vmatprep.mubr.bf16.mxu1 %v590_v41 }
 0x547   :  { %1421 = vmatmul.mubr.bf16.vlgmr.msra.gmra.mrb[8].mxu1 %v591_v40 }
 0x548   :  { %1445 = vmatpush3.bf16.msra.mxu1 %v1856_v50 }
 0x549   :  { %1446 = vmatprep.subr.bf16.mxu1 %v1858_v51 }
 0x54c   :  { %1447 = vmatpush3.bf16.msra.mxu1 %v1858_v51 }
 0x54d   :  { %1448 = vmatprep.subr.bf16.mxu1 %v1864_v52 }
 0x550   :  { %1449 = vmatpush3.bf16.msra.mxu1 %v1864_v52 }
 0x551   :  { %1450 = vmatprep.subr.bf16.mxu1 %v1868_v53 }
 0x554   :  { %1451 = vmatpush3.bf16.msra.mxu1 %v1868_v53 }
 0x555   :  { %1452 = vmatprep.subr.bf16.mxu1 %v1872_v54 }
 0x558   :  { %1453 = vmatpush3.bf16.msra.mxu1 %v1872_v54 }
 0x559   :  { %1454 = vmatprep.subr.bf16.mxu1 %v1876_v55 }
 0x55c   :  { %1455 = vmatpush3.bf16.msra.mxu1 %v1876_v55 }
 0x55d   :  { %1456 = vmatprep.subr.bf16.mxu1 %v1892_v62 }
 0x560   :  { %1457 = vmatpush3.bf16.msra.mxu1 %v1892_v62 }
 0x561   :  { %1458 = vmatprep.subr.bf16.mxu1 %v1898_v63 }
 0x564   :  { %1459 = vmatpush3.bf16.msra.mxu1 %v1898_v63 }
 0x565   :  { %1484 = vmatprep.subr.bf16.mxu1 %v1856_v50 }
 0x61a   :  { %v1422_v42 = vpop.f32.mrb[8].mxu1 }
 0x61b   :  { %v626_v43 = vpop.f32.mrb[9].mxu1  ;;  %v635_v45 = vadd.f32 %v1422_v42, %v1922_v19 }
 0x61c   :  { %v1423_v44 = vpop.f32.mrb[10].mxu1  ;;  %v627_v48 = vadd.f32 %v626_v43, %v1926_v22 }
 0x61d   :  { %v638_v46 = vadd.f32 %v1423_v44, %v1924_v20  ;;  %v629_v47 = vpop.f32.mrb[11].mxu1 }
 0x61e   :  { %v630_v49 = vadd.f32 %v629_v47, %v1928_v23 }
 0x61f   :  { %v642_v56 = vpack.c.bf16 %v638_v46, %v635_v45 }
 0x620   :  { %v641_v57 = vpack.c.bf16 %v630_v49, %v627_v48 }
 0x622   :  { %1440 = vmatprep.mubr.bf16.mxu0 %v641_v57 }
 0x623   :  { %1441 = vmatmul.mubr.bf16.vlgmr.msra.gmra.mrb[16].mxu0 %v642_v56 }
 0x624   :  { %1465 = vmatpush3.bf16.msra.mxu0 %v1856_v50 }
 0x625   :  { %1466 = vmatprep.subr.bf16.mxu0 %v1858_v51 }
 0x628   :  { %1467 = vmatpush3.bf16.msra.mxu0 %v1858_v51 }
 0x629   :  { %1468 = vmatprep.subr.bf16.mxu0 %v1864_v52 }
 0x62c   :  { %1469 = vmatpush3.bf16.msra.mxu0 %v1864_v52 }
 0x62d   :  { %1470 = vmatprep.subr.bf16.mxu0 %v1868_v53 }
 0x630   :  { %1471 = vmatpush3.bf16.msra.mxu0 %v1868_v53 }
 0x631   :  { %1472 = vmatprep.subr.bf16.mxu0 %v1872_v54 }
 0x634   :  { %1473 = vmatpush3.bf16.msra.mxu0 %v1872_v54 }
 0x635   :  { %1474 = vmatprep.subr.bf16.mxu0 %v1876_v55 }
 0x638   :  { %1475 = vmatpush3.bf16.msra.mxu0 %v1876_v55 }
 0x639   :  { %1476 = vmatprep.subr.bf16.mxu0 %v1892_v62 }
 0x63c   :  { %1477 = vmatpush3.bf16.msra.mxu0 %v1892_v62 }
 0x63d   :  { %1478 = vmatprep.subr.bf16.mxu0 %v1898_v63 }
 0x640   :  { %1479 = vmatpush3.bf16.msra.mxu0 %v1898_v63 }
 0x641   :  { %1504 = vmatprep.subr.bf16.mxu0 %v1856_v50 }
 0x6f6   :  { %v1442_v58 = vpop.f32.mrb[16].mxu0 }
 0x6f7   :  { %v677_v59 = vpop.f32.mrb[17].mxu0  ;;  %v686_v61 = vadd.f32 %v1442_v58, %v1922_v19  ;;  %v1602_v58 = vld [vmem:[%s2107_s7] sm:$0xff]  }
 0x6f8   :  { %v1443_v60 = vpop.f32.mrb[18].mxu0  ;;  %v678_v2 = vadd.f32 %v677_v59, %v1926_v22 }
 0x6f9   :  { %v689_v0 = vadd.f32 %v1443_v60, %v1924_v20  ;;  %v680_v1 = vpop.f32.mrb[19].mxu0 }
 0x6fa   :  { %v681_v3 = vadd.f32 %v680_v1, %v1928_v23 }
 0x6fb   :  { %v693_v4 = vpack.c.bf16 %v689_v0, %v686_v61 }
 0x6fc   :  { %v692_v5 = vpack.c.bf16 %v681_v3, %v678_v2 }
 0x6fe   :  { %1460 = vmatprep.mubr.bf16.mxu1 %v692_v5 }
 0x6ff   :  { %1461 = vmatmul.mubr.bf16.vlgmr.msra.gmra.mrb[12].mxu1 %v693_v4 }
 0x700   :  { %1485 = vmatpush3.bf16.msra.mxu1 %v1856_v50 }
 0x701   :  { %1486 = vmatprep.subr.bf16.mxu1 %v1858_v51 }
 0x704   :  { %1487 = vmatpush3.bf16.msra.mxu1 %v1858_v51 }
 0x705   :  { %1488 = vmatprep.subr.bf16.mxu1 %v1864_v52 }
 0x708   :  { %1489 = vmatpush3.bf16.msra.mxu1 %v1864_v52 }
 0x709   :  { %1490 = vmatprep.subr.bf16.mxu1 %v1868_v53 }
 0x70c   :  { %1491 = vmatpush3.bf16.msra.mxu1 %v1868_v53 }
 0x70d   :  { %1492 = vmatprep.subr.bf16.mxu1 %v1872_v54 }
 0x710   :  { %1493 = vmatpush3.bf16.msra.mxu1 %v1872_v54 }
 0x711   :  { %1494 = vmatprep.subr.bf16.mxu1 %v1876_v55 }
 0x714   :  { %1495 = vmatpush3.bf16.msra.mxu1 %v1876_v55 }
 0x715   :  { %1496 = vmatprep.subr.bf16.mxu1 %v1892_v62 }
 0x718   :  { %1497 = vmatpush3.bf16.msra.mxu1 %v1892_v62 }
 0x719   :  { %1498 = vmatprep.subr.bf16.mxu1 %v1898_v63 }
 0x71c   :  { %1499 = vmatpush3.bf16.msra.mxu1 %v1898_v63 }
 0x71d   :  { %1524 = vmatprep.subr.bf16.mxu1 %v1856_v50 }
 0x7d2   :  { %v1462_v6 = vpop.f32.mrb[12].mxu1 }
 0x7d3   :  { %v728_v7 = vpop.f32.mrb[13].mxu1  ;;  %v737_v9 = vadd.f32 %v1462_v6, %v1922_v19 }
 0x7d4   :  { %v1463_v8 = vpop.f32.mrb[14].mxu1  ;;  %v729_v12 = vadd.f32 %v728_v7, %v1926_v22  ;;  %v1603_v7 = vld [vmem:[%s2107_s7 + $0x8] sm:$0xff]   ;;  %s1666_s7 = smov [#allocation5]  }
 0x7d5   :  { %v740_v10 = vadd.f32 %v1463_v8, %v1924_v20  ;;  %v731_v11 = vpop.f32.mrb[15].mxu1  ;;  %v1016_v8 = vpop.permute.xlu1 %1015  ;;  %s1138_s24 = sshll.u32 %s1666_s7, 4  ;;  %s1139_s24 = int_to_ptr.vmem [resolvable:$true] %s1138_s24 }
 0x7d6   :  { %v732_v13 = vadd.f32 %v731_v11, %v1928_v23  ;;  %s1636_s25 = scalar_lea.vmem %s1139_s24, 512  ;;  %p1641_p9 = scmp.lt.s32.totalorder %s1139_s24, %s1139_s24 }
 0x7d7   :  { %v744_v14 = vpack.c.bf16 %v740_v10, %v737_v9  ;;  %p1637_p8 = scmp.ne.s32.totalorder %s1139_s24, %s1636_s25  ;;  %p1642_p10 = scmp.lt.s32.totalorder %s1636_s25, %s1636_s25 }
 0x7d8   :  { %v743_v15 = vpack.c.bf16 %v732_v13, %v729_v12 }
 0x7d9   :  { %p1643_p11 = por %p1642_p10, %p1641_p9 }
 0x7da   :  { %1480 = vmatprep.mubr.bf16.mxu0 %v743_v15 }
 0x7db   :  { %1481 = vmatmul.mubr.bf16.vlgmr.msra.gmra.mrb[20].mxu0 %v744_v14  ;;  %p1644_p12 = pnand %p1643_p11, %p1637_p8 }
 0x7dc   :  { %1505 = vmatpush3.bf16.msra.mxu0 %v1856_v50 }
 0x7dd   :  { %1506 = vmatprep.subr.bf16.mxu0 %v1858_v51 }
 0x7e0   :  { %1507 = vmatpush3.bf16.msra.mxu0 %v1858_v51 }
 0x7e1   :  { %1508 = vmatprep.subr.bf16.mxu0 %v1864_v52 }
 0x7e4   :  { %1509 = vmatpush3.bf16.msra.mxu0 %v1864_v52 }
 0x7e5   :  { %1510 = vmatprep.subr.bf16.mxu0 %v1868_v53 }
 0x7e8   :  { %1511 = vmatpush3.bf16.msra.mxu0 %v1868_v53 }
 0x7e9   :  { %1512 = vmatprep.subr.bf16.mxu0 %v1872_v54 }
 0x7ec   :  { %1513 = vmatpush3.bf16.msra.mxu0 %v1872_v54 }
 0x7ed   :  { %1514 = vmatprep.subr.bf16.mxu0 %v1876_v55 }
 0x7f0   :  { %1515 = vmatpush3.bf16.msra.mxu0 %v1876_v55 }
 0x7f1   :  { %1516 = vmatprep.subr.bf16.mxu0 %v1892_v62 }
 0x7f4   :  { %1517 = vmatpush3.bf16.msra.mxu0 %v1892_v62 }
 0x7f5   :  { %1518 = vmatprep.subr.bf16.mxu0 %v1898_v63 }
 0x7f8   :  { %1519 = vmatpush3.bf16.msra.mxu0 %v1898_v63 }
 0x7f9   :  { %1544 = vmatprep.subr.bf16.mxu0 %v1856_v50 }
 0x8ae   :  { %v1482_v16 = vpop.f32.mrb[20].mxu0 }
 0x8af   :  { %v779_v17 = vpop.f32.mrb[21].mxu0  ;;  %v788_v21 = vadd.f32 %v1482_v16, %v1922_v19 }
 0x8b0   :  { %v1483_v18 = vpop.f32.mrb[22].mxu0  ;;  %v780_v26 = vadd.f32 %v779_v17, %v1926_v22 }
 0x8b1   :  { %v791_v24 = vadd.f32 %v1483_v18, %v1924_v20  ;;  %v782_v25 = vpop.f32.mrb[23].mxu0 }
 0x8b2   :  { %v783_v27 = vadd.f32 %v782_v25, %v1928_v23 }
 0x8b3   :  { %v795_v28 = vpack.c.bf16 %v791_v24, %v788_v21 }
 0x8b4   :  { %v794_v29 = vpack.c.bf16 %v783_v27, %v780_v26 }
 0x8b6   :  { %1500 = vmatprep.mubr.bf16.mxu1 %v794_v29 }
 0x8b7   :  { %1501 = vmatmul.mubr.bf16.vlgmr.msra.gmra.mrb[16].mxu1 %v795_v28 }
 0x8b8   :  { %1525 = vmatpush3.bf16.msra.mxu1 %v1856_v50 }
 0x8b9   :  { %1526 = vmatprep.subr.bf16.mxu1 %v1858_v51 }
 0x8bc   :  { %1527 = vmatpush3.bf16.msra.mxu1 %v1858_v51 }
 0x8bd   :  { %1528 = vmatprep.subr.bf16.mxu1 %v1864_v52 }
 0x8c0   :  { %1529 = vmatpush3.bf16.msra.mxu1 %v1864_v52 }
 0x8c1   :  { %1530 = vmatprep.subr.bf16.mxu1 %v1868_v53 }
 0x8c4   :  { %1531 = vmatpush3.bf16.msra.mxu1 %v1868_v53 }
 0x8c5   :  { %1532 = vmatprep.subr.bf16.mxu1 %v1872_v54 }
 0x8c8   :  { %1533 = vmatpush3.bf16.msra.mxu1 %v1872_v54 }
 0x8c9   :  { %1534 = vmatprep.subr.bf16.mxu1 %v1876_v55 }
 0x8cc   :  { %1535 = vmatpush3.bf16.msra.mxu1 %v1876_v55 }
 0x8cd   :  { %1536 = vmatprep.subr.bf16.mxu1 %v1892_v62 }
 0x8d0   :  { %1537 = vmatpush3.bf16.msra.mxu1 %v1892_v62 }
 0x8d1   :  { %1538 = vmatprep.subr.bf16.mxu1 %v1898_v63 }
 0x8d4   :  { %1539 = vmatpush3.bf16.msra.mxu1 %v1898_v63 }
 0x98a   :  { %v1502_v30 = vpop.f32.mrb[16].mxu1 }
 0x98b   :  { %v830_v31 = vpop.f32.mrb[17].mxu1  ;;  %v839_v33 = vadd.f32 %v1502_v30, %v1922_v19 }
 0x98c   :  { %v1503_v32 = vpop.f32.mrb[18].mxu1  ;;  %v831_v36 = vadd.f32 %v830_v31, %v1926_v22 }
 0x98d   :  { %v842_v34 = vadd.f32 %v1503_v32, %v1924_v20  ;;  %v833_v35 = vpop.f32.mrb[19].mxu1 }
 0x98e   :  { %v834_v37 = vadd.f32 %v833_v35, %v1928_v23 }
 0x98f   :  { %v846_v38 = vpack.c.bf16 %v842_v34, %v839_v33 }
 0x990   :  { %v845_v39 = vpack.c.bf16 %v834_v37, %v831_v36 }
 0x992   :  { %1520 = vmatprep.mubr.bf16.mxu0 %v845_v39 }
 0x993   :  { %1521 = vmatmul.mubr.bf16.vlgmr.msra.gmra.mrb[24].mxu0 %v846_v38 }
 0x994   :  { %1545 = vmatpush3.bf16.msra.mxu0 %v1856_v50 }
 0x995   :  { %1546 = vmatprep.subr.bf16.mxu0 %v1858_v51 }
 0x998   :  { %1547 = vmatpush3.bf16.msra.mxu0 %v1858_v51 }
 0x999   :  { %1548 = vmatprep.subr.bf16.mxu0 %v1864_v52 }
 0x99c   :  { %1549 = vmatpush3.bf16.msra.mxu0 %v1864_v52 }
 0x99d   :  { %1550 = vmatprep.subr.bf16.mxu0 %v1868_v53 }
 0x9a0   :  { %1551 = vmatpush3.bf16.msra.mxu0 %v1868_v53 }
 0x9a1   :  { %1552 = vmatprep.subr.bf16.mxu0 %v1872_v54 }
 0x9a4   :  { %1553 = vmatpush3.bf16.msra.mxu0 %v1872_v54 }
 0x9a5   :  { %1554 = vmatprep.subr.bf16.mxu0 %v1876_v55 }
 0x9a8   :  { %1555 = vmatpush3.bf16.msra.mxu0 %v1876_v55 }
 0x9a9   :  { %1556 = vmatprep.subr.bf16.mxu0 %v1892_v62 }
 0x9ac   :  { %1557 = vmatpush3.bf16.msra.mxu0 %v1892_v62 }
 0x9ad   :  { %1558 = vmatprep.subr.bf16.mxu0 %v1898_v63 }
 0x9b0   :  { %1559 = vmatpush3.bf16.msra.mxu0 %v1898_v63 }
 0xa66   :  { %v1522_v50 = vpop.f32.mrb[24].mxu0 }
 0xa67   :  { %v881_v51 = vpop.f32.mrb[25].mxu0  ;;  %v890_v53 = vadd.f32 %v1522_v50, %v1922_v19 }
 0xa68   :  { %v1523_v52 = vpop.f32.mrb[26].mxu0  ;;  %v882_v41 = vadd.f32 %v881_v51, %v1926_v22 }
 0xa69   :  { %v893_v40 = vadd.f32 %v1523_v52, %v1924_v20  ;;  %v884_v54 = vpop.f32.mrb[27].mxu0 }
 0xa6a   :  { %v885_v55 = vadd.f32 %v884_v54, %v1928_v23 }
 0xa6b   :  { %v897_v42 = vpack.c.bf16 %v893_v40, %v890_v53 }
 0xa6c   :  { %v896_v43 = vpack.c.bf16 %v885_v55, %v882_v41 }
 0xa6e   :  { %1540 = vmatprep.mubr.bf16.mxu1 %v896_v43 }
 0xa6f   :  { %1541 = vmatmul.mubr.bf16.vlgmr.msra.gmra.mrb[20].mxu1 %v897_v42 }
 0xa70   :  { %1568 = vmatprep.mubr.msk.bf16.mxu1 %vm301_vm1, %v1602_v58 }
 0xb42   :  { %v1542_v62 = vpop.f32.mrb[20].mxu1 }
 0xb43   :  { %v932_v44 = vpop.f32.mrb[21].mxu1  ;;  %v941_v63 = vadd.f32 %v1542_v62, %v1922_v19 }
 0xb44   :  { %v1543_v45 = vpop.f32.mrb[22].mxu1  ;;  %v933_v48 = vadd.f32 %v932_v44, %v1926_v22 }
 0xb45   :  { %v944_v46 = vadd.f32 %v1543_v45, %v1924_v20  ;;  %v935_v47 = vpop.f32.mrb[23].mxu1 }
 0xb46   :  { %v936_v49 = vadd.f32 %v935_v47, %v1928_v23 }
 0xb47   :  { %v948_v56 = vpack.c.bf16 %v944_v46, %v941_v63 }
 0xb48   :  { %v947_v57 = vpack.c.bf16 %v936_v49, %v933_v48 }
 0xb4a   :  { %1560 = vmatprep.mubr.bf16.mxu0 %v947_v57 }
 0xb4b   :  { %1561 = vmatmul.mubr.bf16.vlgmr.msra.gmra.mrb[28].mxu0 %v948_v56 }
 0xc1e   :  { %v1562_v59 = vpop.f32.mrb[28].mxu0 }
 0xc1f   :  { %v983_v60 = vpop.f32.mrb[29].mxu0  ;;  %v992_v0 = vadd.f32 %v1562_v59, %v1922_v19  ;;  %v1011_v19 = vpop.permute.xlu0 %1010 }
 0xc20   :  { %v1563_v61 = vpop.f32.mrb[30].mxu0  ;;  %v984_v3 = vadd.f32 %v983_v60, %v1926_v22  ;;  %v1026_v22 = vpop.permute.xlu1 %1025 }
 0xc21   :  { %v995_v1 = vadd.f32 %v1563_v61, %v1924_v20  ;;  %v986_v2 = vpop.f32.mrb[31].mxu0 }
 0xc22   :  { %v987_v4 = vadd.f32 %v986_v2, %v1928_v23 }
 0xc23   :  { %v1003_v5 = vpack.c.bf16 %v995_v1, %v992_v0  ;;  %v1021_v9 = vpop.permute.xlu0 %1020 }
 0xc24   :  { %v1002_v6 = vpack.c.bf16 %v987_v4, %v984_v3 }
 0xc26   :  { %1564 = vmatprep.subr.bf16.mxu1 %v1002_v6 }
 0xc27   :  { %1565 = vmatpush3.bf16.msra.mxu1 %v1002_v6 }
 0xc28   :  { %1566 = vmatprep.subr.bf16.mxu1 %v1003_v5 }
 0xc2b   :  { %1567 = vmatpush3.bf16.msra.mxu1 %v1003_v5 }
 0xc2e   :  { %1569 = vmatmul.mubr.msk.bf16.vlgmr.msra.gmra.mrb[24].mxu1 %vm301_vm1, %v1603_v7 }
 0xd01   :  { %v1570_v20 = vpop.f32.mrb[24].mxu1 }
 0xd02   :  { %v1078_v10 = vpop.f32.mrb[25].mxu1  ;;  %v1087_v23 = vadd.f32 %v1570_v20, %v1021_v9 }
 0xd03   :  { %v1571_v11 = vpop.f32.mrb[26].mxu1  ;;  %v1079_v14 = vadd.f32 %v1078_v10, %v1011_v19 }
 0xd04   :  { %v1090_v12 = vadd.f32 %v1571_v11, %v1026_v22  ;;  %v1081_v13 = vpop.f32.mrb[27].mxu1 }
 0xd05   :  { %v1082_v15 = vadd.f32 %v1081_v13, %v1016_v8 }
 0xd06   :  { %v1094_v16 = vmax.f32 %v1087_v23, %v1090_v12 }
 0xd07   :  { %v1093_v17 = vmax.f32 %v1079_v14, %v1082_v15 }
 0xd09   :  { %v1095_v18 = vmax.f32 %v1093_v17, %v1094_v16 }
 0xd0b   :  { %v1096_v21 = vrot.slane %v1095_v18, 4 }
 0xd0d   :  { %v1097_v24 = vmax.f32 %v1095_v18, %v1096_v21 }
 0xd0f   :  { %v1098_v25 = vrot.slane %v1097_v24, 2 }
 0xd11   :  { %v1099_v26 = vmax.f32 %v1097_v24, %v1098_v25 }
 0xd13   :  { %v1100_v27 = vrot.slane %v1099_v26, 1 }
 0xd15   :  { %v1101_v28 = vmax.f32 %v1099_v26, %v1100_v27 }
 0xd17   :  { %v1102_v29 = vsub.f32 %v1079_v14, %v1101_v28  ;;  %v1103_v30 = vsub.f32 %v1082_v15, %v1101_v28  ;;  %v1104_v31 = vsub.f32 %v1087_v23, %v1101_v28  ;;  %v1105_v32 = vsub.f32 %v1090_v12, %v1101_v28 }
 0xd19   :  { %v1106_v33 = vmul.f32 1.442695, %v1102_v29  ;;  %v1108_v34 = vmul.f32 1.442695, %v1103_v30  ;;  %v1110_v35 = vmul.f32 1.442695, %v1104_v31 }
 0xd1a   :  { %v1112_v36 = vmul.f32 1.442695, %v1105_v32 }
 0xd1b   :  { %1604 = vpow2.f32 %v1106_v33 }
 0xd1c   :  { %1606 = vpow2.f32 %v1108_v34 }
 0xd1d   :  { %1608 = vpow2.f32 %v1110_v35 }
 0xd1e   :  { %1610 = vpow2.f32 %v1112_v36 }
 0xd25   :  { %v1605_v37 = vpop.eup %1604 }
 0xd26   :  { %v1607_v38 = vpop.eup %1606 }
 0xd27   :  { %v1114_v39 = vadd.f32 %v1607_v38, %v1605_v37  ;;  %v1609_v50 = vpop.eup %1608 }
 0xd28   :  { %v1611_v52 = vpop.eup %1610 }
 0xd29   :  { %v1115_v51 = vadd.f32 %v1609_v50, %v1114_v39 }
 0xd2b   :  { %v1116_v53 = vadd.f32 %v1611_v52, %v1115_v51 }
 0xd2d   :  { %v1117_v40 = vrot.slane %v1116_v53, 4 }
 0xd2f   :  { %v1118_v54 = vadd.f32 %v1117_v40, %v1116_v53 }
 0xd31   :  { %v1119_v41 = vrot.slane %v1118_v54, 2 }
 0xd33   :  { %v1120_v55 = vadd.f32 %v1119_v41, %v1118_v54 }
 0xd35   :  { %v1121_v42 = vrot.slane %v1120_v55, 1 }
 0xd37   :  { %v1122_v43 = vadd.f32 %v1121_v42, %v1120_v55 }
 0xd39   :  { %1612 = vlog2.f32 %v1122_v43 }
 0xd43   :  { %v1613_v62 = vpop.eup %1612 }
 0xd44   :  { %v1124_v44 = vmul.f32 0.6931472, %v1613_v62 }
 0xd46   :  { %v1126_v45 = vsub.f32 %v1103_v30, %v1124_v44  ;;  %v1125_v63 = vsub.f32 %v1102_v29, %v1124_v44  ;;  %v1127_v46 = vsub.f32 %v1104_v31, %v1124_v44  ;;  %v1128_v47 = vsub.f32 %v1105_v32, %v1124_v44 }
 0xd48   :  { %1130 = vst [vmem:[#allocation5 + $0x8] sm:$0xff] %v1126_v45  ;;  %1129 = vst [vmem:[#allocation5] sm:$0xff] %v1125_v63 }
 0xd49   :  { %1131 = vst [vmem:[#allocation5 + $0x10] sm:$0xff] %v1127_v46  ;;  %1132 = vst [vmem:[#allocation5 + $0x18] sm:$0xff] %v1128_v47 }
 0xd4a   :  { %1647 = shalt.err (!%p1644_p12)
}
 0xd4b   :  { %s1648_s27 = scalar_lea.hbm %s2109_s9, 512 }
 0xd4c   :  { %p1649_p13 = scmp.ne.s32.totalorder %s2109_s9, %s1648_s27  ;;  %p1652_p0 = scmp.lt.u32.totalorder %s1648_s27, %s2109_s9 }
 0xd4e   :  { %p1654_p1 = pnand %p1652_p0, %p1649_p13 }
 0xd50   :  { %1657 = shalt.err (!%p1654_p1)
}
 0xd51   :  { %s1667_s10 = smov 128   ;;  %s1668_s2 = smov 8  }
 0xd52   :  { %1144 = dma.vmem_to_hbm [thread:$0]  %s1139_s24, 512, %s2109_s9, [#allocation4], %s1667_s10, %s1667_s10, %s1668_s2  }
 0xd53   :  { %1660 = dma.done.wait [#allocation4], 512  }
 0xd54   :  { %1661 = vsyncadd [#allocation4], 4294966784 }
 0xd55   :  { %1148 = vsyncpa [#allocation3], 1 }
 0xd56   :  { %1149 = vsyncpa [#allocation4], 1 }

</bundles_post_ra>
